<compile_context>
chip_gen: v5e
topology: v5e:2x2
jax: 0.10.0
libtpu: 0.0.40
codegen_flags: <defaults>
</compile_context>

<pallas_src>
import functools

import jax
import jax.numpy as jnp
from jax.experimental import pallas as pl
from jax.experimental.pallas import tpu as pltpu


def _round_up(x, m):
    return (x + m - 1) // m * m


def block_kernel(x_ref, w_ref, b_ref, o_ref, *, tb, lp, l_out):
    # x_ref: (tb*lp, Kp)  bf16/f32 im2col patches for TB batch elements
    # w_ref: (Kp, Hp)     repacked conv weight
    # b_ref: (1, Hp)      f32 bias
    # o_ref: (tb, Hp)     per-step output tile
    hp = w_ref.shape[-1]

    # One big MXU matmul: M = tb*lp, K = kernel_s*E (padded), N = Hp.
    acc = jnp.dot(x_ref[...], w_ref[...], preferred_element_type=jnp.float32)

    # Segmented max-pool over the valid conv length for each batch element.
    acc = acc.reshape(tb, lp, hp)          # lp is a multiple of 16 -> cheap
    if lp != l_out:                        # mask padded pooled rows
        row = jax.lax.broadcasted_iota(jnp.int32, (tb, lp, hp), 1)
        acc = jnp.where(row < l_out, acc, -jnp.inf)
    m = jnp.max(acc, axis=1)               # (tb, Hp)

    # Epilogue after the pool: relu(max(conv) + bias) == max(relu(conv + bias)).
    o_ref[...] = jnp.maximum(m + b_ref[...], 0.0).astype(o_ref.dtype)


def block_forward(batch_emb, weight, bias, *, tb=None,
                  compute_dtype=jnp.bfloat16):
    """batch_emb: (B, 1, max_len, E) NCHW; weight: (H, 1, kernel_s, E); bias: (H,)."""
    B, _, max_len, E = batch_emb.shape
    H, _, kernel_s, _ = weight.shape
    l_out = max_len - kernel_s + 1
    K = kernel_s * E

    # Padded sizes: lane-dense K and H, sublane-friendly pooled length.
    Lp = _round_up(l_out, 16)
    Kp = _round_up(K, 128)
    Hp = _round_up(H, 128)

    # Batch tile: target ~512 matmul rows per grid step, keep the (TB, Hp)
    # output block legal (multiple of 8 sublanes unless it spans all of B).
    if tb is None:
        tb = max(1, 512 // Lp)
        tb = min(tb, B)
    if tb >= B:
        tb = B                       # single block over batch (full-dim block)
    else:
        tb = max(8, (tb // 8) * 8)   # sublane-aligned batch tile
    Bp = _round_up(B, tb)

    # im2col: patches[b, l, k*E + e] = x[b, l + k, e]
    x = batch_emb[:, 0, :, :]                                     # (B, max_len, E)
    patches = jnp.stack([x[:, k:k + l_out, :] for k in range(kernel_s)], axis=2)
    patches = patches.reshape(B, l_out, K)
    patches = jnp.pad(patches, ((0, Bp - B), (0, Lp - l_out), (0, Kp - K)))
    patches = patches.reshape(Bp * Lp, Kp).astype(compute_dtype)

    # Weight repack: (H, 1, kernel_s, E) -> (kernel_s*E, H), zero-padded.
    w = jnp.transpose(weight[:, 0, :, :], (1, 2, 0)).reshape(K, H)
    w = jnp.pad(w, ((0, Kp - K), (0, Hp - H))).astype(compute_dtype)
    b2 = jnp.pad(bias.astype(jnp.float32), (0, Hp - H)).reshape(1, Hp)

    kernel = functools.partial(block_kernel, tb=tb, lp=Lp, l_out=l_out)
    out = pl.pallas_call(
        kernel,
        out_shape=jax.ShapeDtypeStruct((Bp, Hp), batch_emb.dtype),
        grid_spec=pltpu.PrefetchScalarGridSpec(
            num_scalar_prefetch=0,
            grid=(Bp // tb,),
            in_specs=[
                pl.BlockSpec((tb * Lp, Kp), lambda i: (i, 0)),
                pl.BlockSpec((Kp, Hp), lambda i: (0, 0)),
                pl.BlockSpec((1, Hp), lambda i: (0, 0)),
            ],
            out_specs=pl.BlockSpec((tb, Hp), lambda i: (i, 0)),
        ),
        compiler_params=pltpu.CompilerParams(
            dimension_semantics=("parallel",)),   # batch axis -> megacore on v7x
    )(patches, w, b2)
    return out[:B, :H]


def ref_forward(batch_emb, weight, bias):
    """Plain-JAX reference matching the PyTorch Block forward (f32)."""
    x = batch_emb[:, 0]                          # (B, max_len, E)
    H, _, ks, E = weight.shape
    L = x.shape[1] - ks + 1
    c = sum(
        jnp.einsum("ble,he->bhl", x[:, k:k + L, :], weight[:, 0, k, :])
        for k in range(ks)
    ) + bias[None, :, None]
    a = jnp.maximum(c, 0.0)
    return jnp.max(a, axis=-1)                   # (B, H)


if __name__ == "__main__":
    # Small shapes consistent with the module's forward.
    B, max_len, E, H, kernel_s = 2, 16, 32, 32, 3

    key = jax.random.PRNGKey(0)
    kx, kw, kb = jax.random.split(key, 3)

    batch_emb = jax.random.normal(kx, (B, 1, max_len, E), jnp.float32)

    # Deterministic PyTorch-style Conv2d init (uniform in +/- 1/sqrt(fan_in)).
    fan_in = 1 * kernel_s * E
    bound = 1.0 / (fan_in ** 0.5)
    weight = jax.random.uniform(kw, (H, 1, kernel_s, E), jnp.float32, -bound, bound)
    bias = jax.random.uniform(kb, (H,), jnp.float32, -bound, bound)

    ref = ref_forward(batch_emb, weight, bias)

    # f32 compute path: exact check against the reference.
    out_f32 = jax.block_until_ready(
        block_forward(batch_emb, weight, bias, compute_dtype=jnp.float32))
    assert out_f32.shape == (B, H), out_f32.shape
    assert jnp.allclose(out_f32, ref, atol=1e-5, rtol=1e-5), "f32 mismatch vs reference"

    # bf16 compute path (default, MXU-native): loose tolerance vs f32 reference.
    out_bf16 = jax.block_until_ready(block_forward(batch_emb, weight, bias))
    assert out_bf16.shape == (B, H), out_bf16.shape
    assert jnp.allclose(out_bf16, ref, atol=5e-2, rtol=5e-2), "bf16 mismatch vs reference"

    print("KERNEL_OK")
</pallas_src>

<mosaic_0001>
module attributes {stable_mosaic.version = 11 : i64} {
  func.func @block_kernel(%arg0: i32, %arg1: memref<32x128xf32, #tpu.memory_space<vmem>>, %arg2: memref<128x128xf32, #tpu.memory_space<vmem>>, %arg3: memref<1x128xf32, #tpu.memory_space<vmem>>, %arg4: memref<2x128xf32, #tpu.memory_space<vmem>>) attributes {dimension_semantics = [#tpu.dimension_semantics<parallel>], iteration_bounds = array<i64: 1>, scalar_prefetch = 0 : i64, scratch_operands = 0 : i64, tpu.core_type = #tpu.core_type<tc>, window_params = [{transform_indices = @transform_0, window_bounds = array<i64: 32, 128>}, {pipeline_mode = #tpu.pipeline_mode<synchronous>, transform_indices = @transform_1, window_bounds = array<i64: 128, 128>}, {pipeline_mode = #tpu.pipeline_mode<synchronous>, transform_indices = @transform_2, window_bounds = array<i64: 1, 128>}, {transform_indices = @transform_3, window_bounds = array<i64: 2, 128>}]} {
    %c0 = arith.constant 0 : index
    %c0_0 = arith.constant 0 : index
    %0 = vector.load %arg1[%c0, %c0_0] : memref<32x128xf32, #tpu.memory_space<vmem>>, vector<32x128xf32>
    %c0_1 = arith.constant 0 : index
    %c0_2 = arith.constant 0 : index
    %1 = vector.load %arg2[%c0_1, %c0_2] : memref<128x128xf32, #tpu.memory_space<vmem>>, vector<128x128xf32>
    %cst = arith.constant dense<0.000000e+00> : vector<32x128xf32>
    %2 = tpu.matmul %0, %1, %cst {dimension_numbers = #tpu.dot_dimension_numbers<[1], [0], [0], [1], [0, 0, 1, 1], [], []>} : vector<32x128xf32>, vector<128x128xf32>, vector<32x128xf32> -> vector<32x128xf32>
    %3 = vector.shape_cast %2 : vector<32x128xf32> to vector<2x16x128xf32>
    %4 = tpu.iota {dimensions = array<i32: 1>} : vector<2x16x128xi32>
    %c14_i32 = arith.constant 14 : i32
    %5 = vector.broadcast %c14_i32 : i32 to vector<2x16x128xi32>
    %6 = arith.cmpi slt, %4, %5 : vector<2x16x128xi32>
    %cst_3 = arith.constant 0xFF800000 : f32
    %7 = vector.broadcast %cst_3 : f32 to vector<2x16x128xf32>
    %8 = arith.select %6, %3, %7 : vector<2x16x128xi1>, vector<2x16x128xf32>
    %cst_4 = arith.constant dense<0xFF800000> : vector<2x128xf32>
    %9 = vector.multi_reduction <maximumf>, %8, %cst_4 [1] : vector<2x16x128xf32> to vector<2x128xf32>
    %c0_5 = arith.constant 0 : index
    %c0_6 = arith.constant 0 : index
    %10 = vector.load %arg3[%c0_5, %c0_6] : memref<1x128xf32, #tpu.memory_space<vmem>>, vector<1x128xf32>
    %11 = vector.broadcast %10 : vector<1x128xf32> to vector<2x128xf32>
    %12 = arith.addf %9, %11 : vector<2x128xf32>
    %cst_7 = arith.constant 0.000000e+00 : f32
    %13 = vector.broadcast %cst_7 : f32 to vector<2x128xf32>
    %14 = arith.maximumf %12, %13 : vector<2x128xf32>
    %c0_8 = arith.constant 0 : index
    %c0_9 = arith.constant 0 : index
    %15 = vector.load %arg4[%c0_8, %c0_9] : memref<2x128xf32, #tpu.memory_space<vmem>>, vector<2x128xf32>
    tpu.vector_store %arg4[%c0_8, %c0_9], %14 {strides = array<i32>} : memref<2x128xf32, #tpu.memory_space<vmem>>, vector<2x128xf32>,
    return
  }
  func.func @transform_0(%arg0: i32) -> (i32, i32) {
    %c0_i32 = arith.constant 0 : i32
    %c0_i32_0 = arith.constant 0 : i32
    return %arg0, %c0_i32 : i32, i32
  }
  func.func @transform_1(%arg0: i32) -> (i32, i32) {
    %c0_i32 = arith.constant 0 : i32
    %c0_i32_0 = arith.constant 0 : i32
    %c0_i32_1 = arith.constant 0 : i32
    return %c0_i32, %c0_i32_0 : i32, i32
  }
  func.func @transform_2(%arg0: i32) -> (i32, i32) {
    %c0_i32 = arith.constant 0 : i32
    %c0_i32_0 = arith.constant 0 : i32
    %c0_i32_1 = arith.constant 0 : i32
    return %c0_i32, %c0_i32_0 : i32, i32
  }
  func.func @transform_3(%arg0: i32) -> (i32, i32) {
    %c0_i32 = arith.constant 0 : i32
    %c0_i32_0 = arith.constant 0 : i32
    return %arg0, %c0_i32 : i32, i32
  }
}

</mosaic_0001>

<bundles_post_ra>
// kernel: tpu_custom_call.1
= control target key start
LH: loop header
LB: loop body
LE: loop exit
PB: predicated region body
PF: predicated region fallthrough
CT: control target
= control target key end

     0   :  { %8 = vsyncpa [#allocation3], 0  ;;  %s321_s0 = inlined_call_operand.hbm [shape: f32[32,128], index: 0, kind: input, shape index: {}]   ;;  %s322_s1 = inlined_call_operand.hbm [shape: f32[128,128], index: 1, kind: input, shape index: {}]   ;;  %s323_s2 = inlined_call_operand.vmem [shape: f32[1,128], index: 2, kind: input, shape index: {}]   ;;  %s324_s3 = inlined_call_operand.hbm [shape: f32[2,128], index: 3, kind: output, shape index: {}]  }
   0x1   :  { %9 = vsyncpa [#allocation6], 0 }
   0x2   :  { %10 = vsyncpa [#allocation4], 0  ;;  %s15_s14 = sshll.u32 %s321_s0, 4  ;;  %s284_s15 = smov [#allocation2]   ;;  %s16_s14 = int_to_ptr.hbm [resolvable:$true] %s15_s14 }
   0x3   :  { %s17_s16 = sshll.u32 %s284_s15, 4  ;;  %s28_s19 = sshll.u32 %s322_s1, 4  ;;  %s18_s16 = int_to_ptr.vmem [resolvable:$true] %s17_s16  ;;  %s29_s19 = int_to_ptr.hbm [resolvable:$true] %s28_s19 }
   0x4   :  { %s285_s20 = smov 128   ;;  %s286_s21 = smov 8  }
   0x5   :  { %23 = dma.hbm_to_vmem [thread:$0]  %s16_s14, 512, %s18_s16, [#allocation3], %s285_s20, %s285_s20, %s286_s21  }
   0x6   :  { %s287_s22 = smov [#allocation5]  }
   0x7   :  { %s30_s23 = sshll.u32 %s287_s22, 4  ;;  %s31_s23 = int_to_ptr.vmem [resolvable:$true] %s30_s23 }
   0x8   :  { %36 = dma.hbm_to_vmem [thread:$0]  %s29_s19, 2048, %s31_s23, [#allocation6], %s285_s20, %s285_s20, %s286_s21  }
   0x9   :  { %278 = dma.done.wait [#allocation3], 512  }
   0xa   :  { %279 = vsyncadd [#allocation3], 4294966784 }
   0xb   :  { %280 = dma.done.wait [#allocation6], 2048  }
   0xc   :  { %281 = vsyncadd [#allocation6], 4294965248  ;;  %v66_v0 = vld [vmem:[#allocation5 + $0x78] sm:$0xff]  ;;  %v65_v1 = vld [vmem:[#allocation5 + $0x70] sm:$0xff]  ;;  %v96_v20 = vlaneseq  ;;  %s288_s24 = smov [#allocation7]   ;;  %s141_s28 = sshll.u32 %s324_s3, 4  ;;  %s142_s28 = int_to_ptr.hbm [resolvable:$true] %s141_s28 }
   0xd   :  { %154 = vmatpush.msra.mxu3 %v66_v0  ;;  %153 = vmatpush.msra.mxu2 %v66_v0  ;;  %v64_v2 = vld [vmem:[#allocation5 + $0x68] sm:$0xff]  ;;  %v63_v3 = vld [vmem:[#allocation5 + $0x60] sm:$0xff]  ;;  %v62_v4 = vld [vmem:[#allocation5 + $0x58] sm:$0xff]  ;;  %s139_s25 = sshll.u32 %s288_s24, 4  ;;  %vm130_vm1 = vcmask 1041409   ;;  %s140_s25 = int_to_ptr.vmem [resolvable:$true] %s139_s25 }
   0xe   :  { %152 = vmatpush.msra.mxu1 %v66_v0  ;;  %67 = vmatpush.msra.mxu0 %v66_v0  ;;  %v61_v5 = vld [vmem:[#allocation5 + $0x50] sm:$0xff]  ;;  %v60_v6 = vld [vmem:[#allocation5 + $0x48] sm:$0xff]  ;;  %v59_v7 = vld [vmem:[#allocation5 + $0x40] sm:$0xff]  ;;  %v97_v21 = vshrl.u32 %v96_v20, 7 }
   0xf   :  { %157 = vmatpush.msra.mxu3 %v65_v1  ;;  %156 = vmatpush.msra.mxu2 %v65_v1  ;;  %v58_v8 = vld [vmem:[#allocation5 + $0x38] sm:$0xff]  ;;  %v57_v9 = vld [vmem:[#allocation5 + $0x30] sm:$0xff]  ;;  %v56_v10 = vld [vmem:[#allocation5 + $0x28] sm:$0xff] }
  0x10   :  { %155 = vmatpush.msra.mxu1 %v65_v1  ;;  %68 = vmatpush.msra.mxu0 %v65_v1  ;;  %v55_v11 = vld [vmem:[#allocation5 + $0x20] sm:$0xff]  ;;  %v54_v12 = vld [vmem:[#allocation5 + $0x18] sm:$0xff]  ;;  %v53_v13 = vld [vmem:[#allocation5 + $0x10] sm:$0xff]  ;;  %v98_v22 = vadd.s32 8, %v97_v21 }
  0x11   :  { %160 = vmatpush.msra.mxu3 %v64_v2  ;;  %159 = vmatpush.msra.mxu2 %v64_v2  ;;  %v52_v14 = vld [vmem:[#allocation5 + $0x8] sm:$0xff]  ;;  %v51_v15 = vld [vmem:[#allocation5] sm:$0xff]  ;;  %v50_v16 = vld [vmem:[#allocation2 + $0x18] sm:$0xff] }
  0x12   :  { %158 = vmatpush.msra.mxu1 %v64_v2  ;;  %69 = vmatpush.msra.mxu0 %v64_v2  ;;  %v49_v17 = vld [vmem:[#allocation2 + $0x10] sm:$0xff]  ;;  %v48_v18 = vld [vmem:[#allocation2 + $0x8] sm:$0xff]  ;;  %v47_v19 = vld [vmem:[#allocation2] sm:$0xff]  ;;  %vm100_vm0 = vcmp.lt.s32.totalorder %v98_v22, 14 }
  0x13   :  { %163 = vmatpush.msra.mxu3 %v63_v3  ;;  %162 = vmatpush.msra.mxu2 %v63_v3  ;;  %v205_v41 = vld [vmem:[%s323_s2] ss:$0 sm:$0xff] }
  0x14   :  { %161 = vmatpush.msra.mxu1 %v63_v3  ;;  %70 = vmatpush.msra.mxu0 %v63_v3 }
  0x15   :  { %166 = vmatpush.msra.mxu3 %v62_v4  ;;  %165 = vmatpush.msra.mxu2 %v62_v4 }
  0x16   :  { %164 = vmatpush.msra.mxu1 %v62_v4  ;;  %71 = vmatpush.msra.mxu0 %v62_v4 }
  0x17   :  { %169 = vmatpush.msra.mxu3 %v61_v5  ;;  %168 = vmatpush.msra.mxu2 %v61_v5 }
  0x18   :  { %167 = vmatpush.msra.mxu1 %v61_v5  ;;  %72 = vmatpush.msra.mxu0 %v61_v5 }
  0x19   :  { %172 = vmatpush.msra.mxu3 %v60_v6  ;;  %171 = vmatpush.msra.mxu2 %v60_v6 }
  0x1a   :  { %170 = vmatpush.msra.mxu1 %v60_v6  ;;  %73 = vmatpush.msra.mxu0 %v60_v6 }
  0x1b   :  { %175 = vmatpush.msra.mxu3 %v59_v7  ;;  %174 = vmatpush.msra.mxu2 %v59_v7 }
  0x1c   :  { %173 = vmatpush.msra.mxu1 %v59_v7  ;;  %74 = vmatpush.msra.mxu0 %v59_v7 }
  0x1d   :  { %178 = vmatpush.msra.mxu3 %v58_v8  ;;  %177 = vmatpush.msra.mxu2 %v58_v8 }
  0x1e   :  { %176 = vmatpush.msra.mxu1 %v58_v8  ;;  %75 = vmatpush.msra.mxu0 %v58_v8 }
  0x1f   :  { %181 = vmatpush.msra.mxu3 %v57_v9  ;;  %180 = vmatpush.msra.mxu2 %v57_v9 }
  0x20   :  { %179 = vmatpush.msra.mxu1 %v57_v9  ;;  %76 = vmatpush.msra.mxu0 %v57_v9 }
  0x21   :  { %184 = vmatpush.msra.mxu3 %v56_v10  ;;  %183 = vmatpush.msra.mxu2 %v56_v10 }
  0x22   :  { %182 = vmatpush.msra.mxu1 %v56_v10  ;;  %77 = vmatpush.msra.mxu0 %v56_v10 }
  0x23   :  { %187 = vmatpush.msra.mxu3 %v55_v11  ;;  %186 = vmatpush.msra.mxu2 %v55_v11 }
  0x24   :  { %185 = vmatpush.msra.mxu1 %v55_v11  ;;  %78 = vmatpush.msra.mxu0 %v55_v11 }
  0x25   :  { %190 = vmatpush.msra.mxu3 %v54_v12  ;;  %189 = vmatpush.msra.mxu2 %v54_v12 }
  0x26   :  { %188 = vmatpush.msra.mxu1 %v54_v12  ;;  %79 = vmatpush.msra.mxu0 %v54_v12 }
  0x27   :  { %193 = vmatpush.msra.mxu3 %v53_v13  ;;  %192 = vmatpush.msra.mxu2 %v53_v13 }
  0x28   :  { %191 = vmatpush.msra.mxu1 %v53_v13  ;;  %80 = vmatpush.msra.mxu0 %v53_v13 }
  0x29   :  { %196 = vmatpush.msra.mxu3 %v52_v14  ;;  %195 = vmatpush.msra.mxu2 %v52_v14 }
  0x2a   :  { %194 = vmatpush.msra.mxu1 %v52_v14  ;;  %81 = vmatpush.msra.mxu0 %v52_v14 }
  0x2b   :  { %199 = vmatpush.msra.mxu3 %v51_v15  ;;  %198 = vmatpush.msra.mxu2 %v51_v15 }
  0x2c   :  { %92 = vmatmul.f32.vlgmr.msra.gmra.mxu3 %v50_v16  ;;  %197 = vmatpush.msra.mxu1 %v51_v15 }
  0x2d   :  { %89 = vmatmul.f32.vlgmr.msra.gmra.mxu2 %v49_v17  ;;  %82 = vmatpush.msra.mxu0 %v51_v15 }
  0x2e   :  { %86 = vmatmul.f32.vlgmr.msra.gmra.mxu1 %v48_v18  ;;  %83 = vmatmul.f32.vlgmr.msra.gmra.mxu0 %v47_v19 }
  0xab   :  { %v87_v23 = vpop.f32.mrf.mxu1  ;;  %v84_v24 = vpop.f32.mrf.mxu0 }
  0xac   :  { %v102_v25 = vsel %vm100_vm0, %v87_v23, -inf }
  0xad   :  { %v105_v26 = vmax.f32 %v84_v24, %v102_v25 }
  0xaf   :  { %v106_v27 = vrot.slane %v105_v26, 4  ;;  %v93_v28 = vpop.f32.mrf.mxu3 }
  0xb0   :  { %v104_v29 = vsel %vm100_vm0, %v93_v28, -inf  ;;  %v90_v30 = vpop.f32.mrf.mxu2 }
  0xb1   :  { %v107_v31 = vmax.f32 %v105_v26, %v106_v27  ;;  %v112_v32 = vmax.f32 %v90_v30, %v104_v29 }
  0xb3   :  { %v108_v33 = vrot.slane %v107_v31, 2  ;;  %v113_v34 = vrot.slane %v112_v32, 4 }
  0xb5   :  { %v109_v35 = vmax.f32 %v107_v31, %v108_v33  ;;  %v114_v36 = vmax.f32 %v112_v32, %v113_v34 }
  0xb7   :  { %v110_v37 = vrot.slane %v109_v35, 1  ;;  %v115_v38 = vrot.slane %v114_v36, 2 }
  0xb9   :  { %v116_v39 = vmax.f32 %v114_v36, %v115_v38  ;;  %v111_v40 = vmax.f32 %v109_v35, %v110_v37 }
  0xbb   :  { %v117_v42 = vrot.slane %v116_v39, 1  ;;  %v123_v44 = vadd.f32 %v205_v41, %v111_v40 }
  0xbd   :  { %v118_v43 = vmax.f32 %v116_v39, %v117_v42  ;;  %v125_v47 = vmax.f32 %v123_v44, 0.0 }
  0xbf   :  { %v124_v45 = vadd.f32 %v205_v41, %v118_v43 }
  0xc1   :  { %v126_v46 = vmax.f32 %v124_v45, 0.0 }
  0xc3   :  { %v129_v48 = vrot.slane %v126_v46, 7 }
  0xc5   :  { %v131_v49 = vsel %vm130_vm1, %v129_v48, %v125_v47 }
  0xc6   :  { %133 = vst [vmem:[#allocation7] sm:$0x3] %v131_v49 }
  0xc7   :  { %144 = dma.vmem_to_hbm [thread:$0]  %s140_s25, 32, %s142_s28, [#allocation4]  }
  0xc8   :  { %282 = dma.done.wait [#allocation4], 32  }
  0xc9   :  { %283 = vsyncadd [#allocation4], 4294967264 }
  0xca   :  { %149 = vsyncpa [#allocation3], 1 }
  0xcb   :  { %150 = vsyncpa [#allocation6], 1 }
  0xcc   :  { %151 = vsyncpa [#allocation4], 1 }

</bundles_post_ra>
